<compile_context>
chip_gen: v5e
topology: v5e:2x2
jax: 0.10.0
libtpu: 0.0.40
codegen_flags: <defaults>
</compile_context>

<pallas_src>
import functools

import jax
import jax.numpy as jnp
from jax.experimental import pallas as pl
from jax.experimental.pallas import tpu as pltpu


def _round_up(x, m):
    return ((x + m - 1) // m) * m


def _row_tile(n, max_tile):
    # Row tile: multiple of 16 (legal for bf16 blocks too), capped at max_tile.
    # Ragged last blocks are fine: OOB reads are row-local garbage that never
    # escapes its own row, OOB stores are masked by Pallas.
    if n >= max_tile:
        return max_tile
    return _round_up(max(n, 16), 16)


def _block_diag(mats):
    rows = sum(m.shape[0] for m in mats)
    cols = sum(m.shape[1] for m in mats)
    out = jnp.zeros((rows, cols), mats[0].dtype)
    r = c = 0
    for m in mats:
        out = out.at[r:r + m.shape[0], c:c + m.shape[1]].set(m)
        r += m.shape[0]
        c += m.shape[1]
    return out


# =============================================================================
# Pallas kernel 1: per-voxel feature table (mlps_in + folded xyz@W_pos)
# =============================================================================
def _table_kernel(nv, x_ref, w_ref, b_ref, t_ref):
    # x_ref: (tn, Cin+3) bf16  = [features ++ absolute voxel center]
    # w_ref: (Cin+3, Cmid) bf16 = [W_in ; W_pos]  (BN scale folded offline)
    t = jnp.dot(x_ref[...], w_ref[...], preferred_element_type=jnp.float32)
    t = t + b_ref[...]
    rows = (pl.program_id(0) * t_ref.shape[0]
            + jax.lax.broadcasted_iota(jnp.int32, t.shape, 0))
    # Zero padding rows so a (never-selected) pad row can't inject NaN/Inf
    # through the downstream one-hot gather matmul.
    t_ref[...] = jnp.where(rows < nv, t, 0.0).astype(t_ref.dtype)


def build_voxel_table(feats, voxel_xyz, w_in, b_in, w_pos, n_tbl, max_tile=4096):
    nv, cin = feats.shape
    cmid = w_in.shape[1]
    # Fused concat + bf16 cast: the kernel's dominant HBM read is bf16
    # (MXU-native on all generations).
    xfull = jnp.concatenate(
        [feats.astype(jnp.float32), voxel_xyz], axis=-1).astype(jnp.bfloat16)
    wfull = jnp.concatenate([w_in, w_pos], axis=0).astype(jnp.bfloat16)
    bias = b_in.reshape(1, -1).astype(jnp.float32)
    tn = min(max_tile, n_tbl)
    return pl.pallas_call(
        functools.partial(_table_kernel, nv),
        out_shape=jax.ShapeDtypeStruct((n_tbl, cmid), jnp.bfloat16),
        grid=(pl.cdiv(n_tbl, tn),),
        in_specs=[pl.BlockSpec((tn, cin + 3), lambda i: (i, 0)),
                  pl.BlockSpec((cin + 3, cmid), lambda i: (0, 0)),
                  pl.BlockSpec((1, cmid), lambda i: (0, 0))],
        out_specs=pl.BlockSpec((tn, cmid), lambda i: (i, 0)),
        compiler_params=pltpu.CompilerParams(
            dimension_semantics=("parallel",),
            vmem_limit_bytes=32 * 1024 * 1024),
    )(xfull, wfull, bias)


# =============================================================================
# Pallas kernel 2: fused in-kernel gather + max-pool + pos term + mlps_out
#   refs = [sel_0, tbl_0, ..., sel_{S-1}, tbl_{S-1}, qv, w_pos, b_pos,
#           w_out, b_out, out]
# =============================================================================
def _group_pool_kernel(num_src, *refs):
    o_ref = refs[-1]
    qv_ref, wp_ref, bp_ref, wo_ref, bo_ref = refs[2 * num_src:2 * num_src + 5]
    tm = o_ref.shape[0]
    pooled_parts = []
    for s in range(num_src):
        sel = refs[2 * s][...]            # (tm, ns) int32; -1 => empty query
        tbl = refs[2 * s + 1][...]        # (n_tbl, Cmid) bf16, VMEM-resident
        n_tbl = tbl.shape[0]
        row_ids = jax.lax.broadcasted_iota(jnp.int32, (tm, n_tbl), 1)
        pooled = None
        for j in range(sel.shape[1]):
            # One-hot row gather on the MXU (exact selection of bf16 rows).
            onehot = jnp.where(sel[:, j:j + 1] == row_ids, 1.0, 0.0
                               ).astype(tbl.dtype)
            g = jnp.dot(onehot, tbl, preferred_element_type=jnp.float32)
            pooled = g if pooled is None else jnp.maximum(pooled, g)
        pooled_parts.append(pooled)       # (tm, Cmid) f32
    pooled_cat = (pooled_parts[0] if num_src == 1
                  else jnp.concatenate(pooled_parts, axis=-1))
    # Query-side position term.  qv rows are new_xyz * valid, so fully-empty
    # queries reduce to relu(b_pos) exactly like pcdet's zeroed grouped inputs.
    q = jnp.dot(qv_ref[...], wp_ref[...], preferred_element_type=jnp.float32)
    h = jnp.maximum(pooled_cat - q + bp_ref[...], 0.0)        # relu + max-pool done
    y = jnp.dot(h.astype(wo_ref.dtype), wo_ref[...],
                preferred_element_type=jnp.float32)           # block-diag mlps_out
    o_ref[...] = jnp.maximum(y + bo_ref[...], 0.0).astype(o_ref.dtype)


def group_pool_fused(sel_list, tables, qv, w_pos_blk, b_pos_cat, w_out_blk,
                     b_out_cat, out_dtype=jnp.bfloat16, max_tile=1024):
    num_src = len(sel_list)
    M = sel_list[0].shape[0]
    cout = b_out_cat.shape[-1]
    tm = _row_tile(M, max_tile)
    operands, in_specs = [], []
    for s in range(num_src):
        sel = sel_list[s]
        tbl = tables[s]
        ns = sel.shape[1]
        ntb, cmid = tbl.shape
        operands += [sel, tbl]
        in_specs += [pl.BlockSpec((tm, ns), lambda i: (i, 0)),
                     # Whole table resident in VMEM; constant block index so
                     # the pipeline does not re-copy it between row tiles.
                     pl.BlockSpec((ntb, cmid), lambda i: (0, 0))]
    operands += [qv, w_pos_blk, b_pos_cat, w_out_blk, b_out_cat]
    in_specs += [pl.BlockSpec((tm, qv.shape[1]), lambda i: (i, 0)),
                 pl.BlockSpec(w_pos_blk.shape, lambda i: (0, 0)),
                 pl.BlockSpec(b_pos_cat.shape, lambda i: (0, 0)),
                 pl.BlockSpec(w_out_blk.shape, lambda i: (0, 0)),
                 pl.BlockSpec(b_out_cat.shape, lambda i: (0, 0))]
    # VMEM budget at tm=1024, n_tbl<=2048 (lane padding counted):
    #   sel  : 2 src * 2 buf * 1024*128*4B ~ 2.0 MiB
    #   qv   : 2 buf * 1024*128*4B         ~ 1.0 MiB
    #   tbl  : 2 src * 2 buf * 2048*128*2B ~ 2.0 MiB
    #   out  : 2 buf * 1024*128*2B         ~ 0.5 MiB
    #   one-hot temps                      ~ 4.0 MiB
    # => < 10 MiB, inside the explicit 32 MiB limit below (safe on v7x: 32 MiB
    # scoped default, 64 MiB physical per TensorCore).
    # TODO(synk): the one-hot MXU gather is O(M*ns*Nv*Cmid); for large voxel
    # tables switch to a Mosaic dynamic-gather / manual DMA-gather path (or
    # fall back to an XLA gather feeding the kernel) and page the table.
    return pl.pallas_call(
        functools.partial(_group_pool_kernel, num_src),
        out_shape=jax.ShapeDtypeStruct((M, cout), out_dtype),
        grid=(pl.cdiv(M, tm),),
        in_specs=in_specs,
        out_specs=pl.BlockSpec((tm, cout), lambda i: (i, 0)),
        # "parallel" lets the v7x megacore shard the row axis across both
        # TensorCores; it is a no-op on single-core v5e/v6e.
        compiler_params=pltpu.CompilerParams(
            dimension_semantics=("parallel",),
            vmem_limit_bytes=32 * 1024 * 1024),
    )(*operands)


# =============================================================================
# JAX glue (data-dependent voxel query / hash scatter — stays in XLA)
# =============================================================================
def roi_grid_points(rois_flat, grid_size):
    g = jnp.arange(grid_size, dtype=jnp.float32)
    i0, i1, i2 = jnp.meshgrid(g, g, g, indexing="ij")
    didx = jnp.stack([i0.ravel(), i1.ravel(), i2.ravel()], axis=-1)     # (G3, 3)
    lwh = rois_flat[:, 3:6]
    local = (didx[None, :, :] + 0.5) / float(grid_size) * lwh[:, None, :] \
        - 0.5 * lwh[:, None, :]
    cosa = jnp.cos(rois_flat[:, 6])[:, None]
    sina = jnp.sin(rois_flat[:, 6])[:, None]
    x, y, z = local[..., 0], local[..., 1], local[..., 2]
    gx = x * cosa - y * sina + rois_flat[:, 0:1]
    gy = x * sina + y * cosa + rois_flat[:, 1:2]
    gz = z + rois_flat[:, 2:3]
    return jnp.stack([gx, gy, gz], axis=-1)                             # (R, G3, 3)


def get_voxel_centers(coords_zyx, stride, voxel_size, pc_range):
    vsz = jnp.asarray(voxel_size, jnp.float32) * float(stride)
    pcr = jnp.asarray(pc_range[:3], jnp.float32)
    xyz = coords_zyx[:, [2, 1, 0]].astype(jnp.float32)
    return (xyz + 0.5) * vsz + pcr


def voxel_query(new_xyz, new_coords, v2p, voxel_xyz, query_range, radius, nsample):
    # new_coords: (M, 4) int32 [bs, x, y, z];  v2p: (B, Z, Y, X) int32 (-1 = empty)
    B, Z, Y, X = v2p.shape
    rz, ry, rx = query_range
    dz, dy, dx = jnp.meshgrid(jnp.arange(-rz, rz + 1), jnp.arange(-ry, ry + 1),
                              jnp.arange(-rx, rx + 1), indexing="ij")
    offs = jnp.stack([dz.ravel(), dy.ravel(), dx.ravel()], axis=-1)   # (K, 3) z,y,x
    bs = new_coords[:, 0:1]
    zc = new_coords[:, 3:4] + offs[None, :, 0]
    yc = new_coords[:, 2:3] + offs[None, :, 1]
    xc = new_coords[:, 1:2] + offs[None, :, 2]
    inb = (zc >= 0) & (zc < Z) & (yc >= 0) & (yc < Y) & (xc >= 0) & (xc < X)
    flat = ((bs * Z + jnp.clip(zc, 0, Z - 1)) * Y + jnp.clip(yc, 0, Y - 1)) * X \
        + jnp.clip(xc, 0, X - 1)
    pidx = jnp.take(v2p.reshape(-1), flat)                            # (M, K)
    pidx = jnp.where(inb, pidx, -1)
    centers = jnp.take(voxel_xyz, jnp.clip(pidx, 0, voxel_xyz.shape[0] - 1), axis=0)
    d2 = jnp.sum((centers - new_xyz[:, None, :]) ** 2, axis=-1)
    ok = (pidx >= 0) & (d2 < radius * radius)
    # First-nsample selection via cumsum rank + one-hot reduce.
    # TODO(synk): neighbors are taken in this code's z/y/x window traversal
    # order; if pcdet's CUDA voxel_query traverses differently, a different
    # subset may be chosen when more than nsample voxels fall inside the radius.
    rank = jnp.cumsum(ok.astype(jnp.int32), axis=1) - 1               # (M, K)
    dest = jnp.where(ok, rank, nsample)
    onehot = dest[:, :, None] == jnp.arange(nsample)[None, None, :]   # (M, K, ns)
    sel_idx = jnp.sum(jnp.where(onehot, pidx[:, :, None], 0), axis=1)  # (M, ns)
    n_valid = jnp.sum(ok.astype(jnp.int32), axis=1)                   # (M,)
    sel_ok = jnp.arange(nsample)[None, :] < n_valid[:, None]
    any_ok = n_valid > 0
    sel_idx = jnp.where(sel_ok, sel_idx, sel_idx[:, 0:1])   # duplicate first (ball query)
    sel_idx = jnp.where(any_ok[:, None], sel_idx, -1)       # empty -> no one-hot match
    return sel_idx.astype(jnp.int32), any_ok


def voxel_roi_pooling_forward(params, batch_dict, model_cfg, voxel_size, pc_range):
    rois = batch_dict["rois"]                                # (B, num_rois, 7)
    B = batch_dict["batch_size"]
    grid_size = model_cfg["grid_size"]
    G3 = grid_size ** 3

    rois_flat = rois.reshape(-1, rois.shape[-1]).astype(jnp.float32)
    roi_grid_xyz = roi_grid_points(rois_flat, grid_size).reshape(B, -1, 3)

    cx = jnp.floor((roi_grid_xyz[..., 0:1] - pc_range[0]) / voxel_size[0])
    cy = jnp.floor((roi_grid_xyz[..., 1:2] - pc_range[1]) / voxel_size[1])
    cz = jnp.floor((roi_grid_xyz[..., 2:3] - pc_range[2]) / voxel_size[2])
    roi_grid_coords = jnp.concatenate([cx, cy, cz], axis=-1)          # (B, P, 3)
    P = roi_grid_coords.shape[1]
    batch_idx = jnp.broadcast_to(
        jnp.arange(B, dtype=jnp.float32)[:, None, None], (B, P, 1))
    new_xyz = roi_grid_xyz.reshape(-1, 3)                             # (M, 3)

    layer_cfg = model_cfg["pool_layers"]
    sel_list, tables, qv_parts = [], [], []
    w_pos_l, b_pos_l, w_out_l, b_out_l = [], [], [], []
    for src in layer_cfg["features_source"]:
        stride = batch_dict["multi_scale_3d_strides"][src]
        sp = batch_dict["multi_scale_3d_features"][src]
        coords = sp["indices"]                                # (Nv, 4) [bs, z, y, x]
        feats = sp["features"]                                # (Nv, Cin)
        Zs, Ys, Xs = sp["spatial_shape"]
        voxel_xyz = get_voxel_centers(coords[:, 1:4], stride, voxel_size, pc_range)

        v2p = -jnp.ones((B, Zs, Ys, Xs), jnp.int32)           # generate_voxel2pinds
        v2p = v2p.at[coords[:, 0], coords[:, 1], coords[:, 2], coords[:, 3]].set(
            jnp.arange(coords.shape[0], dtype=jnp.int32))

        cur = jnp.floor(roi_grid_coords / float(stride))
        cur = jnp.concatenate([batch_idx, cur], axis=-1).astype(jnp.int32)
        cur = cur.reshape(-1, 4)

        p = params[src]                                       # BN folded offline
        n_tbl = _round_up(max(coords.shape[0], 1), 128)
        table = build_voxel_table(feats, voxel_xyz, p["w_in"], p["b_in"],
                                  p["w_pos"], n_tbl)          # [Pallas]
        sel, valid = voxel_query(
            new_xyz, cur, v2p, voxel_xyz,
            layer_cfg[src]["query_ranges"][0],
            layer_cfg[src]["pool_radius"][0],
            layer_cfg[src]["nsample"][0])
        sel_list.append(sel)
        tables.append(table)
        qv_parts.append(new_xyz * valid[:, None].astype(jnp.float32))
        w_pos_l.append(p["w_pos"])
        b_pos_l.append(p["b_pos"])
        w_out_l.append(p["w_out"])
        b_out_l.append(p["b_out"])

    qv = jnp.concatenate(qv_parts, axis=-1).astype(jnp.float32)       # (M, 3S)
    w_pos_blk = _block_diag(w_pos_l).astype(jnp.float32)              # (3S, sumCmid)
    b_pos_cat = jnp.concatenate(
        [b.reshape(1, -1) for b in b_pos_l], axis=-1).astype(jnp.float32)
    w_out_blk = _block_diag(w_out_l).astype(jnp.bfloat16)             # (sumCmid, sumCout)
    b_out_cat = jnp.concatenate(
        [b.reshape(1, -1) for b in b_out_l], axis=-1).astype(jnp.float32)

    pooled = group_pool_fused(sel_list, tables, qv, w_pos_blk, b_pos_cat,
                              w_out_blk, b_out_cat)                   # [Pallas]

    out = dict(batch_dict)
    out["pooled_features"] = pooled.reshape(-1, G3, pooled.shape[-1])
    return out


# =============================================================================
# Deterministic parameter / data construction
# =============================================================================
def fold_bn(key, c):
    k1, k2, k3, k4 = jax.random.split(key, 4)
    gamma = 1.0 + 0.1 * jax.random.normal(k1, (c,), jnp.float32)
    beta = 0.1 * jax.random.normal(k2, (c,), jnp.float32)
    mean = 0.1 * jax.random.normal(k3, (c,), jnp.float32)
    var = 0.5 + jax.random.uniform(k4, (c,), jnp.float32)
    scale = gamma / jnp.sqrt(var + 1e-5)
    bias = beta - mean * scale
    return scale, bias


def init_pool_params(key, c_in, c_mid, c_out):
    ks = jax.random.split(key, 6)
    w_in = jax.random.normal(ks[0], (c_in, c_mid), jnp.float32) * (2.0 / (c_in + c_mid)) ** 0.5
    s_in, b_in = fold_bn(ks[1], c_mid)
    w_pos = jax.random.normal(ks[2], (3, c_mid), jnp.float32) * (2.0 / (3 + c_mid)) ** 0.5
    s_pos, b_pos = fold_bn(ks[3], c_mid)
    w_out = jax.random.normal(ks[4], (c_mid, c_out), jnp.float32) * (2.0 / (c_mid + c_out)) ** 0.5
    s_out, b_out = fold_bn(ks[5], c_out)
    return dict(w_in=w_in, s_in=s_in, b_in=b_in, w_pos=w_pos, s_pos=s_pos, b_pos=b_pos,
                w_out=w_out, s_out=s_out, b_out=b_out)


def fold_scale_into_weights(p):
    # Offline: fold the eval-mode BatchNorm scale into the 1x1 conv weights.
    return dict(
        w_in=p["w_in"] * p["s_in"][None, :], b_in=p["b_in"],
        w_pos=p["w_pos"] * p["s_pos"][None, :], b_pos=p["b_pos"],
        w_out=p["w_out"] * p["s_out"][None, :], b_out=p["b_out"])


def make_sparse_source(key, batch_size, spatial, nv_per_batch, c):
    Z, Y, X = spatial
    coords_list = []
    for b in range(batch_size):
        key, sub = jax.random.split(key)
        perm = jax.random.permutation(sub, Z * Y * X)[:nv_per_batch]
        z = perm // (Y * X)
        y = (perm // X) % Y
        x = perm % X
        bcol = jnp.full((nv_per_batch,), b, jnp.int32)
        coords_list.append(jnp.stack([bcol, z, y, x], axis=-1).astype(jnp.int32))
    coords = jnp.concatenate(coords_list, axis=0)
    key, sub = jax.random.split(key)
    feats = jax.random.normal(sub, (coords.shape[0], c), jnp.float32)
    return {"indices": coords, "features": feats, "spatial_shape": spatial}


if __name__ == "__main__":
    key = jax.random.PRNGKey(0)
    B, num_rois, grid_size = 2, 16, 4
    voxel_size = (0.2, 0.2, 0.2)
    pc_range = (-3.2, -3.2, -3.2, 3.2, 3.2, 3.2)
    backbone_channels = {"x_conv3": 32, "x_conv4": 32}
    model_cfg = {
        "grid_size": grid_size,
        "features_source": ["x_conv3", "x_conv4"],
        "pool_layers": {
            "features_source": ["x_conv3", "x_conv4"],
            "x_conv3": dict(mlps=[[32, 32]], query_ranges=[[1, 1, 1]],
                            nsample=[8], pool_radius=[1.6], pool_method="max_pool"),
            "x_conv4": dict(mlps=[[32, 32]], query_ranges=[[1, 1, 1]],
                            nsample=[8], pool_radius=[3.2], pool_method="max_pool"),
        },
    }
    strides = {"x_conv3": 4, "x_conv4": 8}

    k1, k2, k3, k4, k5, k6 = jax.random.split(key, 6)
    centers = jax.random.uniform(k1, (B, num_rois, 3), minval=-2.0, maxval=2.0)
    sizes = jax.random.uniform(k2, (B, num_rois, 3), minval=1.5, maxval=3.0)
    yaw = jax.random.uniform(k3, (B, num_rois, 1), minval=-3.14, maxval=3.14)
    rois = jnp.concatenate([centers, sizes, yaw], axis=-1)

    src3 = make_sparse_source(k4, B, (8, 8, 8), 128, backbone_channels["x_conv3"])
    src4 = make_sparse_source(k5, B, (4, 4, 4), 64, backbone_channels["x_conv4"])

    params = {}
    pkeys = jax.random.split(k6, 2)
    for i, src in enumerate(model_cfg["pool_layers"]["features_source"]):
        mlp = [backbone_channels[src]] + model_cfg["pool_layers"][src]["mlps"][0]
        params[src] = fold_scale_into_weights(
            init_pool_params(pkeys[i], mlp[0], mlp[1], mlp[2]))

    batch_dict = {
        "batch_size": B,
        "rois": rois,
        "multi_scale_3d_strides": strides,
        "multi_scale_3d_features": {"x_conv3": src3, "x_conv4": src4},
    }

    out = voxel_roi_pooling_forward(params, batch_dict, model_cfg, voxel_size, pc_range)
    pooled = jax.block_until_ready(out["pooled_features"])
    assert pooled.shape == (B * num_rois, grid_size ** 3, 64), pooled.shape
    assert jnp.all(jnp.isfinite(pooled.astype(jnp.float32)))
    print("KERNEL_OK")
</pallas_src>

<mosaic_0001>
module attributes {stable_mosaic.version = 11 : i64} {
  func.func @_table_kernel(%arg0: i32, %arg1: memref<256x35xbf16, #tpu.memory_space<vmem>>, %arg2: memref<35x32xbf16, #tpu.memory_space<vmem>>, %arg3: memref<1x32xf32, #tpu.memory_space<vmem>>, %arg4: memref<256x32xbf16, #tpu.memory_space<vmem>>) attributes {dimension_semantics = [#tpu.dimension_semantics<parallel>], iteration_bounds = array<i64: 1>, scalar_prefetch = 0 : i64, scratch_operands = 0 : i64, tpu.core_type = #tpu.core_type<tc>, window_params = [{transform_indices = @transform_0, window_bounds = array<i64: 256, 35>}, {pipeline_mode = #tpu.pipeline_mode<synchronous>, transform_indices = @transform_1, window_bounds = array<i64: 35, 32>}, {pipeline_mode = #tpu.pipeline_mode<synchronous>, transform_indices = @transform_2, window_bounds = array<i64: 1, 32>}, {transform_indices = @transform_3, window_bounds = array<i64: 256, 32>}]} {
    %c0 = arith.constant 0 : index
    %c0_0 = arith.constant 0 : index
    %0 = vector.load %arg1[%c0, %c0_0] : memref<256x35xbf16, #tpu.memory_space<vmem>>, vector<256x35xbf16>
    %c0_1 = arith.constant 0 : index
    %c0_2 = arith.constant 0 : index
    %1 = vector.load %arg2[%c0_1, %c0_2] : memref<35x32xbf16, #tpu.memory_space<vmem>>, vector<35x32xbf16>
    %cst = arith.constant dense<0.000000e+00> : vector<256x32xf32>
    %2 = tpu.matmul %0, %1, %cst {dimension_numbers = #tpu.dot_dimension_numbers<[1], [0], [0], [1], [0, 0, 1, 1], [], []>} : vector<256x35xbf16>, vector<35x32xbf16>, vector<256x32xf32> -> vector<256x32xf32>
    %c0_3 = arith.constant 0 : index
    %c0_4 = arith.constant 0 : index
    %3 = vector.load %arg3[%c0_3, %c0_4] : memref<1x32xf32, #tpu.memory_space<vmem>>, vector<1x32xf32>
    %4 = vector.broadcast %3 : vector<1x32xf32> to vector<256x32xf32>
    %5 = arith.addf %2, %4 : vector<256x32xf32>
    %c256_i32 = arith.constant 256 : i32
    %6 = arith.muli %arg0, %c256_i32 : i32
    %7 = tpu.iota {dimensions = array<i32: 0>} : vector<256x32xi32>
    %8 = vector.broadcast %6 : i32 to vector<256x32xi32>
    %9 = arith.addi %8, %7 : vector<256x32xi32>
    %c256_i32_5 = arith.constant 256 : i32
    %10 = vector.broadcast %c256_i32_5 : i32 to vector<256x32xi32>
    %11 = arith.cmpi slt, %9, %10 : vector<256x32xi32>
    %cst_6 = arith.constant 0.000000e+00 : f32
    %12 = vector.broadcast %cst_6 : f32 to vector<256x32xf32>
    %13 = arith.select %11, %5, %12 : vector<256x32xi1>, vector<256x32xf32>
    %14 = arith.truncf %13 : vector<256x32xf32> to vector<256x32xbf16>
    %c0_7 = arith.constant 0 : index
    %c0_8 = arith.constant 0 : index
    %15 = vector.load %arg4[%c0_7, %c0_8] : memref<256x32xbf16, #tpu.memory_space<vmem>>, vector<256x32xbf16>
    tpu.vector_store %arg4[%c0_7, %c0_8], %14 {strides = array<i32>} : memref<256x32xbf16, #tpu.memory_space<vmem>>, vector<256x32xbf16>,
    return
  }
  func.func @transform_0(%arg0: i32) -> (i32, i32) {
    %c0_i32 = arith.constant 0 : i32
    %c0_i32_0 = arith.constant 0 : i32
    return %arg0, %c0_i32 : i32, i32
  }
  func.func @transform_1(%arg0: i32) -> (i32, i32) {
    %c0_i32 = arith.constant 0 : i32
    %c0_i32_0 = arith.constant 0 : i32
    %c0_i32_1 = arith.constant 0 : i32
    return %c0_i32, %c0_i32_0 : i32, i32
  }
  func.func @transform_2(%arg0: i32) -> (i32, i32) {
    %c0_i32 = arith.constant 0 : i32
    %c0_i32_0 = arith.constant 0 : i32
    %c0_i32_1 = arith.constant 0 : i32
    return %c0_i32, %c0_i32_0 : i32, i32
  }
  func.func @transform_3(%arg0: i32) -> (i32, i32) {
    %c0_i32 = arith.constant 0 : i32
    %c0_i32_0 = arith.constant 0 : i32
    return %arg0, %c0_i32 : i32, i32
  }
}

</mosaic_0001>

<bundles_post_ra>
// kernel: tpu_custom_call.1
= control target key start
LH: loop header
LB: loop body
LE: loop exit
PB: predicated region body
PF: predicated region fallthrough
CT: control target
= control target key end

     0   :  { %vm200_vm0 = vcmask 1040384   ;;  %vm201_vm1 = vcmask 1041408   ;;  %v613_v1 = vmov 65535   ;;  %vm151_vm2 = vcmask 285696   ;;  %s872_s1 = inlined_call_operand.vmem [shape: bf16[35,32], index: 1, kind: input, shape index: {}]   ;;  %s873_s2 = inlined_call_operand.vmem [shape: f32[1,32], index: 2, kind: input, shape index: {}]   ;;  %s874_s0 = inlined_call_operand.vmem [shape: bf16[256,35], index: 0, kind: input, shape index: {}]   ;;  %s875_s3 = inlined_call_operand.vmem [shape: bf16[256,32], index: 3, kind: output, shape index: {}]  }
   0x1   :  { %v51_v0 = vld [vmem:[%s872_s1 + $0x10] sm:$0x3]  ;;  %v202_v2 = vsel %vm200_vm0, 4294967295, %v613_v1  ;;  %v601_v7 = vld [vmem:[%s872_s1 + $0x8] sm:$0xff]  ;;  %v600_v8 = vld [vmem:[%s872_s1] sm:$0xff]  ;;  %vm459_vm3 = vcmask 257024  }
   0x2   :  { %v145_v3 = vunpack.c.l.b16 %v51_v0  ;;  %v203_v4 = vsel %vm201_vm1, %v202_v2, 0  ;;  %v584_v9 = vld [vmem:[%s874_s0] sm:$0xff]  ;;  %v585_v13 = vld [vmem:[%s874_s0 + $0x8] sm:$0xff]  ;;  %v586_v17 = vld [vmem:[%s874_s0 + $0x10] sm:$0xff] }
   0x3   :  { %v588_v10 = vld [vmem:[%s874_s0 + $0x20] sm:$0xff]  ;;  %v589_v14 = vld [vmem:[%s874_s0 + $0x28] sm:$0xff]  ;;  %v590_v18 = vld [vmem:[%s874_s0 + $0x30] sm:$0xff] }
   0x4   :  { %v148_v5 = vpack.c.b16 %v145_v3, %v145_v3  ;;  %v592_v11 = vld [vmem:[%s874_s0 + $0x40] sm:$0xff]  ;;  %v593_v15 = vld [vmem:[%s874_s0 + $0x48] sm:$0xff]  ;;  %v594_v19 = vld [vmem:[%s874_s0 + $0x50] sm:$0xff] }
   0x5   :  { %v596_v12 = vld [vmem:[%s874_s0 + $0x60] sm:$0xff]  ;;  %v597_v16 = vld [vmem:[%s874_s0 + $0x68] sm:$0xff]  ;;  %v598_v20 = vld [vmem:[%s874_s0 + $0x70] sm:$0xff] }
   0x6   :  { %v205_v6 = vand.u32 %v203_v4, %v148_v5  ;;  %v587_v21 = vld [vmem:[%s874_s0 + $0x18] sm:$0xff]  ;;  %v710_v25 = vld [vmem:[%s873_s2] ss:$0 sm:$0xff] }
   0x7   :  { %v591_v22 = vld [vmem:[%s874_s0 + $0x38] sm:$0xff] }
   0x8   :  { %212 = vmatpush.bf16.msra.mxu0 %v205_v6  ;;  %602 = vmatpush.bf16.msra.mxu1 %v205_v6  ;;  %v595_v23 = vld [vmem:[%s874_s0 + $0x58] sm:$0xff] }
   0x9   :  { %603 = vmatpush.bf16.msra.mxu2 %v205_v6  ;;  %604 = vmatpush.bf16.msra.mxu3 %v205_v6  ;;  %v599_v24 = vld [vmem:[%s874_s0 + $0x78] sm:$0xff] }
   0xc   :  { %213 = vmatpush.bf16.msra.mxu0 %v601_v7  ;;  %605 = vmatpush.bf16.msra.mxu1 %v601_v7 }
   0xd   :  { %606 = vmatpush.bf16.msra.mxu2 %v601_v7  ;;  %607 = vmatpush.bf16.msra.mxu3 %v601_v7 }
  0x10   :  { %214 = vmatpush.bf16.msra.mxu0 %v600_v8  ;;  %608 = vmatpush.bf16.msra.mxu1 %v600_v8 }
  0x11   :  { %609 = vmatpush.bf16.msra.mxu2 %v600_v8  ;;  %610 = vmatpush.bf16.msra.mxu3 %v600_v8 }
  0x13   :  { %568 = vmatmul.msk.bf16.vlgmr.msra.gmra.mxu0 %vm151_vm2, %v584_v9  ;;  %572 = vmatmul.msk.bf16.vlgmr.msra.gmra.mxu1 %vm151_vm2, %v588_v10 }
  0x14   :  { %576 = vmatmul.msk.bf16.vlgmr.msra.gmra.mxu2 %vm151_vm2, %v592_v11  ;;  %580 = vmatmul.msk.bf16.vlgmr.msra.gmra.mxu3 %vm151_vm2, %v596_v12 }
  0x23   :  { %569 = vmatmul.msk.bf16.gmra.mxu0 %vm151_vm2, %v585_v13  ;;  %573 = vmatmul.msk.bf16.gmra.mxu1 %vm151_vm2, %v589_v14 }
  0x24   :  { %577 = vmatmul.msk.bf16.gmra.mxu2 %vm151_vm2, %v593_v15  ;;  %581 = vmatmul.msk.bf16.gmra.mxu3 %vm151_vm2, %v597_v16 }
  0x33   :  { %570 = vmatmul.msk.bf16.gmra.mxu0 %vm151_vm2, %v586_v17  ;;  %574 = vmatmul.msk.bf16.gmra.mxu1 %vm151_vm2, %v590_v18 }
  0x34   :  { %578 = vmatmul.msk.bf16.gmra.mxu2 %vm151_vm2, %v594_v19  ;;  %582 = vmatmul.msk.bf16.gmra.mxu3 %vm151_vm2, %v598_v20 }
  0x43   :  { %571 = vmatmul.msk.bf16.gmra.mxu0 %vm151_vm2, %v587_v21  ;;  %575 = vmatmul.msk.bf16.gmra.mxu1 %vm151_vm2, %v591_v22 }
  0x44   :  { %579 = vmatmul.msk.bf16.gmra.mxu2 %vm151_vm2, %v595_v23  ;;  %583 = vmatmul.msk.bf16.gmra.mxu3 %vm151_vm2, %v599_v24 }
  0x90   :  { %v216_v26 = vpop.f32.mrf.mxu0  ;;  %v236_v27 = vpop.f32.mrf.mxu1 }
  0x91   :  { %v217_v28 = vadd.f32 %v710_v25, %v216_v26  ;;  %v237_v29 = vadd.f32 %v710_v25, %v236_v27 }
  0x93   :  { %v427_v30 = vpack.c.bf16 %v217_v28, %v217_v28  ;;  %v435_v31 = vpack.c.bf16 %v237_v29, %v237_v29 }
  0x95   :  { %460 = vst.msk [vmem:[%s875_s3] sm:$0xf] %vm459_vm3, %v427_v30 }
  0x96   :  { %468 = vst.msk [vmem:[%s875_s3 + $0x20] sm:$0xf] %vm459_vm3, %v435_v31 }
  0x97   :  { %v256_v32 = vpop.f32.mrf.mxu2  ;;  %v276_v33 = vpop.f32.mrf.mxu3 }
  0x98   :  { %v257_v34 = vadd.f32 %v710_v25, %v256_v32  ;;  %v277_v35 = vadd.f32 %v710_v25, %v276_v33  ;;  %v218_v36 = vpop.f32.mrf.mxu0  ;;  %v238_v37 = vpop.f32.mrf.mxu1 }
  0x99   :  { %v219_v38 = vadd.f32 %v710_v25, %v218_v36  ;;  %v239_v39 = vadd.f32 %v710_v25, %v238_v37 }
  0x9a   :  { %v443_v40 = vpack.c.bf16 %v257_v34, %v257_v34  ;;  %v451_v41 = vpack.c.bf16 %v277_v35, %v277_v35 }
  0x9b   :  { %v428_v42 = vpack.c.bf16 %v219_v38, %v219_v38  ;;  %v436_v43 = vpack.c.bf16 %v239_v39, %v239_v39 }
  0x9c   :  { %476 = vst.msk [vmem:[%s875_s3 + $0x40] sm:$0xf] %vm459_vm3, %v443_v40 }
  0x9d   :  { %484 = vst.msk [vmem:[%s875_s3 + $0x60] sm:$0xf] %vm459_vm3, %v451_v41 }
  0x9e   :  { %461 = vst.msk [vmem:[%s875_s3 + $0x4] sm:$0xf] %vm459_vm3, %v428_v42 }
  0x9f   :  { %469 = vst.msk [vmem:[%s875_s3 + $0x24] sm:$0xf] %vm459_vm3, %v436_v43  ;;  %v258_v44 = vpop.f32.mrf.mxu2  ;;  %v278_v45 = vpop.f32.mrf.mxu3 }
  0xa0   :  { %v259_v46 = vadd.f32 %v710_v25, %v258_v44  ;;  %v279_v47 = vadd.f32 %v710_v25, %v278_v45  ;;  %v221_v48 = vpop.f32.mrf.mxu0  ;;  %v241_v49 = vpop.f32.mrf.mxu1 }
  0xa1   :  { %v222_v50 = vadd.f32 %v710_v25, %v221_v48  ;;  %v242_v51 = vadd.f32 %v710_v25, %v241_v49 }
  0xa2   :  { %v444_v52 = vpack.c.bf16 %v259_v46, %v259_v46  ;;  %v452_v53 = vpack.c.bf16 %v279_v47, %v279_v47 }
  0xa3   :  { %v429_v54 = vpack.c.bf16 %v222_v50, %v222_v50  ;;  %v437_v55 = vpack.c.bf16 %v242_v51, %v242_v51 }
  0xa4   :  { %477 = vst.msk [vmem:[%s875_s3 + $0x44] sm:$0xf] %vm459_vm3, %v444_v52 }
  0xa5   :  { %485 = vst.msk [vmem:[%s875_s3 + $0x64] sm:$0xf] %vm459_vm3, %v452_v53 }
  0xa6   :  { %462 = vst.msk [vmem:[%s875_s3 + $0x8] sm:$0xf] %vm459_vm3, %v429_v54 }
  0xa7   :  { %470 = vst.msk [vmem:[%s875_s3 + $0x28] sm:$0xf] %vm459_vm3, %v437_v55  ;;  %v261_v56 = vpop.f32.mrf.mxu2  ;;  %v281_v57 = vpop.f32.mrf.mxu3 }
  0xa8   :  { %v262_v58 = vadd.f32 %v710_v25, %v261_v56  ;;  %v282_v59 = vadd.f32 %v710_v25, %v281_v57  ;;  %v223_v60 = vpop.f32.mrf.mxu0  ;;  %v243_v61 = vpop.f32.mrf.mxu1 }
  0xa9   :  { %v224_v62 = vadd.f32 %v710_v25, %v223_v60  ;;  %v244_v63 = vadd.f32 %v710_v25, %v243_v61 }
  0xaa   :  { %v445_v0 = vpack.c.bf16 %v262_v58, %v262_v58  ;;  %v453_v1 = vpack.c.bf16 %v282_v59, %v282_v59 }
  0xab   :  { %v430_v2 = vpack.c.bf16 %v224_v62, %v224_v62  ;;  %v438_v3 = vpack.c.bf16 %v244_v63, %v244_v63 }
  0xac   :  { %478 = vst.msk [vmem:[%s875_s3 + $0x48] sm:$0xf] %vm459_vm3, %v445_v0 }
  0xad   :  { %486 = vst.msk [vmem:[%s875_s3 + $0x68] sm:$0xf] %vm459_vm3, %v453_v1 }
  0xae   :  { %463 = vst.msk [vmem:[%s875_s3 + $0xc] sm:$0xf] %vm459_vm3, %v430_v2 }
  0xaf   :  { %471 = vst.msk [vmem:[%s875_s3 + $0x2c] sm:$0xf] %vm459_vm3, %v438_v3  ;;  %v263_v4 = vpop.f32.mrf.mxu2  ;;  %v283_v5 = vpop.f32.mrf.mxu3 }
  0xb0   :  { %v264_v6 = vadd.f32 %v710_v25, %v263_v4  ;;  %v284_v7 = vadd.f32 %v710_v25, %v283_v5  ;;  %v226_v8 = vpop.f32.mrf.mxu0  ;;  %v246_v9 = vpop.f32.mrf.mxu1 }
  0xb1   :  { %v227_v10 = vadd.f32 %v710_v25, %v226_v8  ;;  %v247_v11 = vadd.f32 %v710_v25, %v246_v9 }
  0xb2   :  { %v446_v12 = vpack.c.bf16 %v264_v6, %v264_v6  ;;  %v454_v13 = vpack.c.bf16 %v284_v7, %v284_v7 }
  0xb3   :  { %v431_v14 = vpack.c.bf16 %v227_v10, %v227_v10  ;;  %v439_v15 = vpack.c.bf16 %v247_v11, %v247_v11 }
  0xb4   :  { %479 = vst.msk [vmem:[%s875_s3 + $0x4c] sm:$0xf] %vm459_vm3, %v446_v12 }
  0xb5   :  { %487 = vst.msk [vmem:[%s875_s3 + $0x6c] sm:$0xf] %vm459_vm3, %v454_v13 }
  0xb6   :  { %464 = vst.msk [vmem:[%s875_s3 + $0x10] sm:$0xf] %vm459_vm3, %v431_v14 }
  0xb7   :  { %472 = vst.msk [vmem:[%s875_s3 + $0x30] sm:$0xf] %vm459_vm3, %v439_v15  ;;  %v266_v16 = vpop.f32.mrf.mxu2  ;;  %v286_v17 = vpop.f32.mrf.mxu3 }
  0xb8   :  { %v267_v18 = vadd.f32 %v710_v25, %v266_v16  ;;  %v287_v19 = vadd.f32 %v710_v25, %v286_v17  ;;  %v228_v20 = vpop.f32.mrf.mxu0  ;;  %v248_v21 = vpop.f32.mrf.mxu1 }
  0xb9   :  { %v229_v22 = vadd.f32 %v710_v25, %v228_v20  ;;  %v249_v23 = vadd.f32 %v710_v25, %v248_v21 }
  0xba   :  { %v447_v24 = vpack.c.bf16 %v267_v18, %v267_v18  ;;  %v455_v26 = vpack.c.bf16 %v287_v19, %v287_v19 }
  0xbb   :  { %v432_v27 = vpack.c.bf16 %v229_v22, %v229_v22  ;;  %v440_v28 = vpack.c.bf16 %v249_v23, %v249_v23 }
  0xbc   :  { %480 = vst.msk [vmem:[%s875_s3 + $0x50] sm:$0xf] %vm459_vm3, %v447_v24 }
  0xbd   :  { %488 = vst.msk [vmem:[%s875_s3 + $0x70] sm:$0xf] %vm459_vm3, %v455_v26 }
  0xbe   :  { %465 = vst.msk [vmem:[%s875_s3 + $0x14] sm:$0xf] %vm459_vm3, %v432_v27 }
  0xbf   :  { %473 = vst.msk [vmem:[%s875_s3 + $0x34] sm:$0xf] %vm459_vm3, %v440_v28  ;;  %v268_v29 = vpop.f32.mrf.mxu2  ;;  %v288_v30 = vpop.f32.mrf.mxu3 }
  0xc0   :  { %v269_v31 = vadd.f32 %v710_v25, %v268_v29  ;;  %v289_v32 = vadd.f32 %v710_v25, %v288_v30  ;;  %v231_v33 = vpop.f32.mrf.mxu0  ;;  %v251_v34 = vpop.f32.mrf.mxu1 }
  0xc1   :  { %v232_v35 = vadd.f32 %v710_v25, %v231_v33  ;;  %v252_v36 = vadd.f32 %v710_v25, %v251_v34 }
  0xc2   :  { %v448_v37 = vpack.c.bf16 %v269_v31, %v269_v31  ;;  %v456_v38 = vpack.c.bf16 %v289_v32, %v289_v32 }
  0xc3   :  { %v433_v39 = vpack.c.bf16 %v232_v35, %v232_v35  ;;  %v441_v40 = vpack.c.bf16 %v252_v36, %v252_v36 }
  0xc4   :  { %481 = vst.msk [vmem:[%s875_s3 + $0x54] sm:$0xf] %vm459_vm3, %v448_v37 }
  0xc5   :  { %489 = vst.msk [vmem:[%s875_s3 + $0x74] sm:$0xf] %vm459_vm3, %v456_v38 }
  0xc6   :  { %466 = vst.msk [vmem:[%s875_s3 + $0x18] sm:$0xf] %vm459_vm3, %v433_v39 }
  0xc7   :  { %474 = vst.msk [vmem:[%s875_s3 + $0x38] sm:$0xf] %vm459_vm3, %v441_v40  ;;  %v271_v41 = vpop.f32.mrf.mxu2  ;;  %v291_v42 = vpop.f32.mrf.mxu3 }
  0xc8   :  { %v272_v43 = vadd.f32 %v710_v25, %v271_v41  ;;  %v292_v44 = vadd.f32 %v710_v25, %v291_v42  ;;  %v233_v45 = vpop.f32.mrf.mxu0  ;;  %v253_v46 = vpop.f32.mrf.mxu1 }
  0xc9   :  { %v234_v47 = vadd.f32 %v710_v25, %v233_v45  ;;  %v254_v48 = vadd.f32 %v710_v25, %v253_v46 }
  0xca   :  { %v449_v49 = vpack.c.bf16 %v272_v43, %v272_v43  ;;  %v457_v50 = vpack.c.bf16 %v292_v44, %v292_v44 }
  0xcb   :  { %v434_v51 = vpack.c.bf16 %v234_v47, %v234_v47  ;;  %v442_v52 = vpack.c.bf16 %v254_v48, %v254_v48 }
  0xcc   :  { %482 = vst.msk [vmem:[%s875_s3 + $0x58] sm:$0xf] %vm459_vm3, %v449_v49 }
  0xcd   :  { %490 = vst.msk [vmem:[%s875_s3 + $0x78] sm:$0xf] %vm459_vm3, %v457_v50 }
  0xce   :  { %467 = vst.msk [vmem:[%s875_s3 + $0x1c] sm:$0xf] %vm459_vm3, %v434_v51 }
  0xcf   :  { %475 = vst.msk [vmem:[%s875_s3 + $0x3c] sm:$0xf] %vm459_vm3, %v442_v52  ;;  %v273_v53 = vpop.f32.mrf.mxu2  ;;  %v293_v54 = vpop.f32.mrf.mxu3 }
  0xd0   :  { %v274_v55 = vadd.f32 %v710_v25, %v273_v53  ;;  %v294_v56 = vadd.f32 %v710_v25, %v293_v54 }
  0xd2   :  { %v450_v57 = vpack.c.bf16 %v274_v55, %v274_v55  ;;  %v458_v58 = vpack.c.bf16 %v294_v56, %v294_v56 }
  0xd4   :  { %483 = vst.msk [vmem:[%s875_s3 + $0x5c] sm:$0xf] %vm459_vm3, %v450_v57 }
  0xd5   :  { %491 = vst.msk [vmem:[%s875_s3 + $0x7c] sm:$0xf] %vm459_vm3, %v458_v58 }

</bundles_post_ra>
